<compile_context>
chip_gen: v7x
topology: tpu7x:2x2x1
jax: 0.10.0
libtpu: 0.0.40
codegen_flags: <defaults>
</compile_context>

<pallas_src>
import functools

import jax
import jax.numpy as jnp
from jax import lax
from jax.experimental import pallas as pl
from jax.experimental.pallas import tpu as pltpu


def _sepconv_kernel(x_ref, w_ref, o_ref, *, W, KH, KW, TH):
    """One (batch, row-tile) step of the fused separable conv.

    x_ref: (1, Hp, Wp, Cin)        spatially pre-padded image (NHWC), one batch elem
    w_ref: (KH*KW*Cin, Cout_pad)   combined depthwise*pointwise weights (lane-padded)
    o_ref: (1, TH*W, Cout_pad)     lane-dense output slab for this row tile
    """
    row0 = pl.multiple_of(pl.program_id(1) * TH, TH)

    # im2col via ref slices: each tap is a (TH, W, Cin) window of the padded
    # image; concatenated along channels -> (TH, W, KH*KW*Cin).
    taps = []
    for kh in range(KH):
        for kw in range(KW):
            taps.append(x_ref[0, pl.ds(row0 + kh, TH), kw:kw + W, :])
    patches = jnp.concatenate(taps, axis=-1)
    patches = patches.reshape(TH * W, patches.shape[-1])

    # Single MXU matmul does depthwise + pointwise at once; f32 accumulation.
    y = jnp.dot(patches, w_ref[...], preferred_element_type=jnp.float32)
    o_ref[0] = y.astype(o_ref.dtype)


def separable_conv2d(x_nchw, dw_weight, pw_weight, padding=1):
    """x_nchw: (B, Cin, H, W); dw_weight: (Cin, 1, KH, KW); pw_weight: (Cout, Cin, 1, 1)."""
    B, Cin, H, W = x_nchw.shape
    KH, KW = dw_weight.shape[2], dw_weight.shape[3]
    Cout = pw_weight.shape[0]
    # 'same' output (stride=1, dilation=1) as in the module's default config.
    assert KH - 1 == 2 * padding and KW - 1 == 2 * padding

    Cout_pad = ((Cout + 127) // 128) * 128          # lane-dense output stores
    TH = 8 if H % 8 == 0 else H                     # row tile; M = TH*W rows per matmul
    # TODO(synk): for production-size images, halo-DMA row tiles from HBM
    # (memory_space=pl.ANY) instead of holding the full padded image in VMEM,
    # and re-derive the tile size for v7x's 64 MiB VMEM.

    # Glue: NCHW -> NHWC + spatial zero-pad (layout plumbing only).
    x_nhwc = jnp.transpose(x_nchw, (0, 2, 3, 1))                     # (B,H,W,Cin)
    x_pad = jnp.pad(x_nhwc, ((0, 0), (padding, padding), (padding, padding), (0, 0)))
    Hp, Wp = H + 2 * padding, W + 2 * padding

    # Combined weights: W[(kh,kw,c), co] = dw[kh,kw,c] * pw[c,co]; pad Cout -> 128k.
    dw = jnp.transpose(dw_weight[:, 0, :, :], (1, 2, 0))             # (KH,KW,Cin)
    pw = jnp.transpose(pw_weight[:, :, 0, 0], (1, 0))                # (Cin,Cout)
    wc = (dw[:, :, :, None] * pw[None, None, :, :]).reshape(KH * KW * Cin, Cout)
    wc = jnp.pad(wc, ((0, 0), (0, Cout_pad - Cout))).astype(x_nchw.dtype)

    kernel = functools.partial(_sepconv_kernel, W=W, KH=KH, KW=KW, TH=TH)

    out_pad = pl.pallas_call(
        kernel,
        out_shape=jax.ShapeDtypeStruct((B, H * W, Cout_pad), x_nchw.dtype),
        grid_spec=pltpu.PrefetchScalarGridSpec(
            num_scalar_prefetch=0,
            grid=(B, H // TH),
            in_specs=[
                # Full padded image per batch element; block index is constant
                # in h, so it is copied HBM->VMEM once per batch element.
                pl.BlockSpec((1, Hp, Wp, Cin), lambda b, h: (b, 0, 0, 0)),
                pl.BlockSpec((KH * KW * Cin, Cout_pad), lambda b, h: (0, 0)),
            ],
            out_specs=pl.BlockSpec((1, TH * W, Cout_pad), lambda b, h: (b, h, 0)),
        ),
        compiler_params=pltpu.CompilerParams(
            dimension_semantics=("parallel", "parallel"),
            vmem_limit_bytes=32 * 1024 * 1024,
        ),
    )(x_pad, wc)

    # Glue: drop channel padding, back to NCHW (module semantics).
    out = out_pad[:, :, :Cout]                                       # (B, H*W, Cout)
    return jnp.transpose(out, (0, 2, 1)).reshape(B, Cout, H, W)


def _reference(x_nchw, dw_weight, pw_weight, padding=1):
    """Pure-JAX reference matching PyTorch semantics (for correctness check)."""
    Cin = x_nchw.shape[1]
    y = lax.conv_general_dilated(
        x_nchw, dw_weight,
        window_strides=(1, 1), padding=[(padding, padding), (padding, padding)],
        dimension_numbers=("NCHW", "OIHW", "NCHW"),
        feature_group_count=Cin)
    y = lax.conv_general_dilated(
        y, pw_weight,
        window_strides=(1, 1), padding=[(0, 0), (0, 0)],
        dimension_numbers=("NCHW", "OIHW", "NCHW"))
    return y


if __name__ == "__main__":
    # Module config (synthetic, deterministic): in=4, out=8, kernel=3, stride=1, pad=1.
    B, Cin, H, W = 2, 4, 16, 16
    Cout, K = 8, 3

    key = jax.random.PRNGKey(0)
    kx, kdw, kpw = jax.random.split(key, 3)
    x = jax.random.normal(kx, (B, Cin, H, W), dtype=jnp.float32)
    # nn.Conv2d(in, in, k, groups=in, bias=False) weight shape: (Cin, 1, K, K)
    dw_weight = jax.random.normal(kdw, (Cin, 1, K, K), dtype=jnp.float32) * 0.1
    # nn.Conv2d(in, out, 1, bias=False) weight shape: (Cout, Cin, 1, 1)
    pw_weight = jax.random.normal(kpw, (Cout, Cin, 1, 1), dtype=jnp.float32) * 0.1

    out = separable_conv2d(x, dw_weight, pw_weight, padding=1)
    out = jax.block_until_ready(out)

    ref = _reference(x, dw_weight, pw_weight, padding=1)
    assert out.shape == (B, Cout, H, W), out.shape
    assert jnp.allclose(out, ref, atol=1e-5, rtol=1e-5), "mismatch vs reference conv"

    print("KERNEL_OK")
</pallas_src>

<mosaic_0001>
module attributes {stable_mosaic.version = 11 : i64} {
  func.func @_sepconv_kernel(%arg0: i32, %arg1: i32, %arg2: memref<1x18x18x4xf32, #tpu.memory_space<vmem>>, %arg3: memref<36x128xf32, #tpu.memory_space<vmem>>, %arg4: memref<1x128x128xf32, #tpu.memory_space<vmem>>) attributes {dimension_semantics = [#tpu.dimension_semantics<parallel>, #tpu.dimension_semantics<parallel>], iteration_bounds = array<i64: 2, 2>, scalar_prefetch = 0 : i64, scratch_operands = 0 : i64, tpu.core_type = #tpu.core_type<tc>, window_params = [{transform_indices = @transform_0, window_bounds = array<i64: 1, 18, 18, 4>}, {pipeline_mode = #tpu.pipeline_mode<synchronous>, transform_indices = @transform_1, window_bounds = array<i64: 36, 128>}, {transform_indices = @transform_2, window_bounds = array<i64: 1, 128, 128>}]} {
    %c8_i32 = arith.constant 8 : i32
    %0 = arith.muli %arg1, %c8_i32 : i32
    %1 = tpu.assume_multiple %0, 8 : i32
    %c0_i32 = arith.constant 0 : i32
    %2 = arith.addi %1, %c0_i32 : i32
    %c0 = arith.constant 0 : index
    %3 = arith.index_cast %2 : i32 to index
    %c0_0 = arith.constant 0 : index
    %c0_1 = arith.constant 0 : index
    %4 = vector.load %arg2[%c0, %3, %c0_0, %c0_1] : memref<1x18x18x4xf32, #tpu.memory_space<vmem>>, vector<1x8x16x4xf32>
    %5 = vector.shape_cast %4 : vector<1x8x16x4xf32> to vector<8x16x4xf32>
    %c0_i32_2 = arith.constant 0 : i32
    %6 = arith.addi %1, %c0_i32_2 : i32
    %c0_3 = arith.constant 0 : index
    %7 = arith.index_cast %6 : i32 to index
    %c1 = arith.constant 1 : index
    %c0_4 = arith.constant 0 : index
    %8 = vector.load %arg2[%c0_3, %7, %c1, %c0_4] : memref<1x18x18x4xf32, #tpu.memory_space<vmem>>, vector<1x8x16x4xf32>
    %9 = vector.shape_cast %8 : vector<1x8x16x4xf32> to vector<8x16x4xf32>
    %c0_i32_5 = arith.constant 0 : i32
    %10 = arith.addi %1, %c0_i32_5 : i32
    %c0_6 = arith.constant 0 : index
    %11 = arith.index_cast %10 : i32 to index
    %c2 = arith.constant 2 : index
    %c0_7 = arith.constant 0 : index
    %12 = vector.load %arg2[%c0_6, %11, %c2, %c0_7] : memref<1x18x18x4xf32, #tpu.memory_space<vmem>>, vector<1x8x16x4xf32>
    %13 = vector.shape_cast %12 : vector<1x8x16x4xf32> to vector<8x16x4xf32>
    %c1_i32 = arith.constant 1 : i32
    %14 = arith.addi %1, %c1_i32 : i32
    %c0_8 = arith.constant 0 : index
    %15 = arith.index_cast %14 : i32 to index
    %c0_9 = arith.constant 0 : index
    %c0_10 = arith.constant 0 : index
    %16 = vector.load %arg2[%c0_8, %15, %c0_9, %c0_10] : memref<1x18x18x4xf32, #tpu.memory_space<vmem>>, vector<1x8x16x4xf32>
    %17 = vector.shape_cast %16 : vector<1x8x16x4xf32> to vector<8x16x4xf32>
    %c1_i32_11 = arith.constant 1 : i32
    %18 = arith.addi %1, %c1_i32_11 : i32
    %c0_12 = arith.constant 0 : index
    %19 = arith.index_cast %18 : i32 to index
    %c1_13 = arith.constant 1 : index
    %c0_14 = arith.constant 0 : index
    %20 = vector.load %arg2[%c0_12, %19, %c1_13, %c0_14] : memref<1x18x18x4xf32, #tpu.memory_space<vmem>>, vector<1x8x16x4xf32>
    %21 = vector.shape_cast %20 : vector<1x8x16x4xf32> to vector<8x16x4xf32>
    %c1_i32_15 = arith.constant 1 : i32
    %22 = arith.addi %1, %c1_i32_15 : i32
    %c0_16 = arith.constant 0 : index
    %23 = arith.index_cast %22 : i32 to index
    %c2_17 = arith.constant 2 : index
    %c0_18 = arith.constant 0 : index
    %24 = vector.load %arg2[%c0_16, %23, %c2_17, %c0_18] : memref<1x18x18x4xf32, #tpu.memory_space<vmem>>, vector<1x8x16x4xf32>
    %25 = vector.shape_cast %24 : vector<1x8x16x4xf32> to vector<8x16x4xf32>
    %c2_i32 = arith.constant 2 : i32
    %26 = arith.addi %1, %c2_i32 : i32
    %c0_19 = arith.constant 0 : index
    %27 = arith.index_cast %26 : i32 to index
    %c0_20 = arith.constant 0 : index
    %c0_21 = arith.constant 0 : index
    %28 = vector.load %arg2[%c0_19, %27, %c0_20, %c0_21] : memref<1x18x18x4xf32, #tpu.memory_space<vmem>>, vector<1x8x16x4xf32>
    %29 = vector.shape_cast %28 : vector<1x8x16x4xf32> to vector<8x16x4xf32>
    %c2_i32_22 = arith.constant 2 : i32
    %30 = arith.addi %1, %c2_i32_22 : i32
    %c0_23 = arith.constant 0 : index
    %31 = arith.index_cast %30 : i32 to index
    %c1_24 = arith.constant 1 : index
    %c0_25 = arith.constant 0 : index
    %32 = vector.load %arg2[%c0_23, %31, %c1_24, %c0_25] : memref<1x18x18x4xf32, #tpu.memory_space<vmem>>, vector<1x8x16x4xf32>
    %33 = vector.shape_cast %32 : vector<1x8x16x4xf32> to vector<8x16x4xf32>
    %c2_i32_26 = arith.constant 2 : i32
    %34 = arith.addi %1, %c2_i32_26 : i32
    %c0_27 = arith.constant 0 : index
    %35 = arith.index_cast %34 : i32 to index
    %c2_28 = arith.constant 2 : index
    %c0_29 = arith.constant 0 : index
    %36 = vector.load %arg2[%c0_27, %35, %c2_28, %c0_29] : memref<1x18x18x4xf32, #tpu.memory_space<vmem>>, vector<1x8x16x4xf32>
    %37 = vector.shape_cast %36 : vector<1x8x16x4xf32> to vector<8x16x4xf32>
    %38 = tpu.concatenate %5, %9, %13, %17, %21, %25, %29, %33, %37 in 2 : vector<8x16x4xf32>, vector<8x16x4xf32>, vector<8x16x4xf32>, vector<8x16x4xf32>, vector<8x16x4xf32>, vector<8x16x4xf32>, vector<8x16x4xf32>, vector<8x16x4xf32>, vector<8x16x4xf32> -> vector<8x16x36xf32>
    %39 = vector.shape_cast %38 : vector<8x16x36xf32> to vector<128x36xf32>
    %c0_30 = arith.constant 0 : index
    %c0_31 = arith.constant 0 : index
    %40 = vector.load %arg3[%c0_30, %c0_31] : memref<36x128xf32, #tpu.memory_space<vmem>>, vector<36x128xf32>
    %cst = arith.constant dense<0.000000e+00> : vector<128x128xf32>
    %41 = tpu.matmul %39, %40, %cst {dimension_numbers = #tpu.dot_dimension_numbers<[1], [0], [0], [1], [0, 0, 1, 1], [], []>} : vector<128x36xf32>, vector<36x128xf32>, vector<128x128xf32> -> vector<128x128xf32>
    %c0_32 = arith.constant 0 : index
    %c0_33 = arith.constant 0 : index
    %c0_34 = arith.constant 0 : index
    %42 = vector.load %arg4[%c0_32, %c0_33, %c0_34] : memref<1x128x128xf32, #tpu.memory_space<vmem>>, vector<1x128x128xf32>
    %43 = vector.shape_cast %42 : vector<1x128x128xf32> to vector<128x128xf32>
    %44 = vector.shape_cast %41 : vector<128x128xf32> to vector<1x128x128xf32>
    tpu.vector_store %arg4[%c0_32, %c0_33, %c0_34], %44 {strides = array<i32>} : memref<1x128x128xf32, #tpu.memory_space<vmem>>, vector<1x128x128xf32>,
    return
  }
  func.func @transform_0(%arg0: i32, %arg1: i32) -> (i32, i32, i32, i32) {
    %c0_i32 = arith.constant 0 : i32
    %c0_i32_0 = arith.constant 0 : i32
    %c0_i32_1 = arith.constant 0 : i32
    %c0_i32_2 = arith.constant 0 : i32
    return %arg0, %c0_i32, %c0_i32_0, %c0_i32_1 : i32, i32, i32, i32
  }
  func.func @transform_1(%arg0: i32, %arg1: i32) -> (i32, i32) {
    %c0_i32 = arith.constant 0 : i32
    %c0_i32_0 = arith.constant 0 : i32
    %c0_i32_1 = arith.constant 0 : i32
    return %c0_i32, %c0_i32_0 : i32, i32
  }
  func.func @transform_2(%arg0: i32, %arg1: i32) -> (i32, i32, i32) {
    %c0_i32 = arith.constant 0 : i32
    %c0_i32_0 = arith.constant 0 : i32
    return %arg0, %arg1, %c0_i32 : i32, i32, i32
  }
}

</mosaic_0001>

<bundles_post_ra>
// kernel: tpu_custom_call.1
= control target key start
LH: loop header
LB: loop body
LE: loop exit
PB: predicated region body
PF: predicated region fallthrough
CT: control target
= control target key end

     0   :  { %7 = vsyncpa [#allocation3], 0  ;;  %s2418_s0 = inlined_call_operand.vmem [shape: f32[2,18,18,4], index: 0, kind: input, shape index: {}]   ;;  %s2419_s1 = inlined_call_operand.vmem [shape: f32[36,128], index: 1, kind: input, shape index: {}]   ;;  %s2420_s2 = inlined_call_operand.hbm [shape: f32[2,256,128], index: 2, kind: output, shape index: {}]  }
   0x1   :  { %9 = vsyncpa [#allocation3 + $0x1], 0  ;;  %s1682_s9 = smov 0   ;;  %s1684_s10 = smov 0  }
   0x2   :  { %s1686_s11 = smov 0   ;;  %s1688_s12 = smov 0  }
   0x3   :  { %s1690_s13 = smov 0   ;;  %s1692_s14 = smov 0  }
   0x4   :  { %s1694_s15 = smov 0   ;;  %s1696_s16 = smov 0  }
   0x5 LB: > { %s1279_s17 = sadd.s32 4294967295, %s1655_s16   ;;  %s1280_s18 = sadd.s32 4294967294, %s1655_s16   ;;  %s1655_s16 = sphi %s1696_s16, %s15_s16   ;;  %s1651_s15 = sphi %s1694_s15, %s2444_s15   ;;  %s1647_s14 = sphi %s1692_s14, %s2443_s14   ;;  %s1643_s13 = sphi %s1690_s13, %s2442_s13   ;;  %s1639_s12 = sphi %s1688_s12, %s2441_s12   ;;  %s1635_s11 = sphi %s1686_s11, %s2440_s11   ;;  %s1631_s10 = sphi %s1684_s10, %s2439_s10   ;;  %s1627_s9 = sphi %s1682_s9, %s2438_s9  }
   0x6   : > { %s24_s19 = sadd.s32 1, %s1647_s14  ;;  %s27_s20 = sadd.s32 1, %s1651_s15 }
   0x7   : > { %p25_p0 = scmp.ge.s32.totalorder %s24_s19, 2  ;;  %p93_p1 = scmp.ne.s32.totalorder %s1635_s11, %s1631_s10 }
   0x8   : > { %p94_p2 = scmp.eq.s32.totalorder %s1279_s17, 3  ;;  %p99_p5 = scmp.ne.s32.totalorder %s1631_s10, %s1627_s9 }
   0x9   : > { %s2446_s19 = smov (%p25_p0, %s24_s19), 0  ;;  %s2448_s20 = smov (!%p25_p0, %s27_s20), %s1651_s15 }
   0xa   : > { %s79_s21 = ssub.s32 %s1647_s14, %s2446_s19  ;;  %p1733_p3 = por %p94_p2, %p93_p1 }
   0xb   : > { %p29_p4 = scmp.ge.s32.totalorder %s2448_s20, 2  ;;  %p100_p6 = scmp.eq.s32.totalorder %s1280_s18, 3 }
   0xc   : > { %p1283_p7 = scmp.ge.s32.totalorder %s1655_s16, 1  ;;  %p129_p9 = scmp.lt.s32.totalorder %s1655_s16, 5 }
   0xd   : > { %s2450_s20 = smov (%p29_p4, %s2448_s20), 0  ;;  %p1742_p8 = por %p100_p6, %p99_p5 }
   0xe   : > { %s78_s24 = ssub.s32 %s1651_s15, %s2450_s20  ;;  %s83_s25 = sadd.s32 1, %s1635_s11 }
   0xf   : > { %s80_s26 = sor.u32 %s79_s21, %s78_s24  ;;  %p130_p10 = pnand %p1283_p7, %p129_p9 }
  0x10   : > { %p81_p11 = scmp.eq.s32.totalorder %s80_s26, 0 }
  0x11   : > { %133 = sbr.rel (%p130_p10) target bundleno = 629 (0x275), region = 28 }
  0x12   : > { %s1751_s27 = scalar_select %p81_p11, %s1635_s11, %s83_s25  }
  0x18   : > { %p151_p12 = scmp.lt.s32.totalorder %s1643_s13, 1  ;;  %s1287_s29 = smul.u32 192, %s1639_s12  ;;  %v958_v26 = vld [vmem:[%s2419_s1] sm:$0xff]  ;;  %v959_v27 = vld [vmem:[%s2419_s1 + $0x8] sm:$0xff]  ;;  %v960_v31 = vld [vmem:[%s2419_s1 + $0x10] sm:$0xff]  ;;  %vm1012_vm0 = vcmask 1043456  }
  0x19   : > { %s1657_s7 = smov 4   ;;  %s1658_s8 = smov 8   ;;  %v1466_v30 = vpack.c.bf16 %v959_v27, %v958_v26  ;;  %v961_v32 = vld [vmem:[%s2419_s1 + $0x18] sm:$0xff]  ;;  %v962_v36 = vld [vmem:[%s2419_s1 + $0x20] sm:$0xf]  ;;  %vm822_vm1 = vcmask 31744  }
  0x1a   : > { %s152_s28 = scalar_select %p151_p12, %s1643_s13, 1  ;;  %v1470_v35 = vpack.c.bf16 %v961_v32, %v960_v31  ;;  %vm839_vm2 = vcmask 64512   ;;  %vm856_vm3 = vcmask 97280   ;;  %vm873_vm4 = vcmask 130048  }
  0x1b   : > { %s1659_s17 = smov 12   ;;  %s1660_s18 = smov 16   ;;  %1467 = vmatprep.subr.bf16.mxu0 %v1466_v30  ;;  %1474 = vmatprep.subr.bf16.mxu1 %v1466_v30  ;;  %vm890_vm5 = vcmask 162816   ;;  %vm907_vm6 = vcmask 195584   ;;  %vm924_vm7 = vcmask 228352   ;;  %vm941_vm8 = vcmask 261120  }
  0x1c   : > { %s1480_s30 = smul.u32 432, %s152_s28  ;;  %s1661_s21 = smov 20   ;;  %1469 = vmatpush3.bf16.msra.mxu0 %v1466_v30  ;;  %1477 = vmatpush3.bf16.msra.mxu1 %v1466_v30  ;;  %vm963_vm9 = vcmask 293888  }
  0x1d   : > { %s1662_s24 = smov 24   ;;  %s1663_s25 = smov 28   ;;  %1471 = vmatprep.subr.bf16.mxu0 %v1470_v35  ;;  %1475 = vmatprep.subr.bf16.mxu1 %v1470_v35 }
  0x1e   : > { %s155_s5 = scalar_lea.vmem %s2418_s0, %s1480_s30  ;;  %s1664_s28 = smov 32  }
  0x1f   : > { %s1759_s6 = scalar_lea.vmem %s155_s5, %s1287_s29 }
  0x20   : > { %v177_v0 = vld [vmem:[%s1759_s6 + $0x9] sm:$0xff]  ;;  %v176_v1 = vld [vmem:[%s1759_s6 + $0x1] sm:$0xff]  ;;  %v1790_v8 = vld [vmem:[%s1759_s6 + $0x78] sm:$0xff]  ;;  %1473 = vmatpush3.bf16.msra.mxu0 %v1470_v35  ;;  %1478 = vmatpush3.bf16.msra.mxu1 %v1470_v35 }
  0x21   : > { %328 = vrot.lane.b32.xlu1 %v177_v0, %s1657_s7  ;;  %326 = vrot.lane.b32.xlu0 %v176_v1, %s1657_s7  ;;  %v1766_v2 = vld [vmem:[%s1759_s6 + $0x69] sm:$0xff]  ;;  %v1769_v3 = vld [vmem:[%s1759_s6 + $0x61] sm:$0xff] }
  0x22   : > { %v1776_v4 = vld [vmem:[%s1759_s6 + $0x62] sm:$0xff]  ;;  %v1783_v6 = vld [vmem:[%s1759_s6 + $0x6a] sm:$0xff]  ;;  %v1793_v9 = vld [vmem:[%s1759_s6 + $0x18] sm:$0xff]  ;;  %1440 = vmatprep.subr.msk.mxu0 %vm1012_vm0, %v962_v36  ;;  %1476 = vmatprep.subr.msk.mxu1 %vm1012_vm0, %v962_v36 }
  0x23   : > { %v192_v5 = vld [vmem:[%s1759_s6 + $0x2] sm:$0xff]  ;;  %v193_v7 = vld [vmem:[%s1759_s6 + $0xa] sm:$0xff]  ;;  %v1810_v12 = vld [vmem:[%s1759_s6 + $0x79] sm:$0xff] }
  0x24   : > { %v1800_v10 = vld [vmem:[%s1759_s6 + $0x80] sm:$0xff]  ;;  %v1847_v20 = vld [vmem:[%s1759_s6 + $0x90] sm:$0xff]  ;;  %v1864_v22 = vld [vmem:[%s1759_s6 + $0x98] sm:$0xff]  ;;  %1441 = vmatpush3.msk.msra.mxu0 %vm1012_vm0, %v962_v36  ;;  %1479 = vmatpush3.msk.msra.mxu1 %vm1012_vm0, %v962_v36 }
  0x25   : > { %344 = vrot.lane.b32.xlu1 %v1766_v2, %s1657_s7  ;;  %342 = vrot.lane.b32.xlu0 %v1769_v3, %s1657_s7  ;;  %v1803_v11 = vld [vmem:[%s1759_s6 + $0x20] sm:$0xff]  ;;  %v1850_v21 = vld [vmem:[%s1759_s6 + $0x30] sm:$0xff] }
  0x26   : > { %v1306_v13 = vld [vmem:[%s1759_s6 + $0x19] sm:$0xff]  ;;  %v1820_v14 = vld [vmem:[%s1759_s6 + $0x81] sm:$0xff]  ;;  %v1364_v24 = vld [vmem:[%s1759_s6 + $0x91] sm:$0xff] }
  0x27   : > { %v1307_v15 = vld [vmem:[%s1759_s6 + $0x21] sm:$0xff]  ;;  %v1867_v23 = vld [vmem:[%s1759_s6 + $0x38] sm:$0xff]  ;;  %v1951_v47 = vld [vmem:[%s1759_s6 + $0xb0] sm:$0xff] }
  0x28   : > { %v1827_v16 = vld [vmem:[%s1759_s6 + $0x7a] sm:$0xff]  ;;  %v1840_v18 = vld [vmem:[%s1759_s6 + $0x82] sm:$0xff]  ;;  %v1356_v25 = vld [vmem:[%s1759_s6 + $0x31] sm:$0xff]  ;;  %2431 = vst [vmem:[#allocation8_spill] sm:$0xff] %v1951_v47 }
  0x29   : > { %406 = vrot.lane.b32.xlu1 %v1776_v4, %s1658_s8  ;;  %390 = vrot.lane.b32.xlu0 %v192_v5, %s1658_s8  ;;  %v1322_v17 = vld [vmem:[%s1759_s6 + $0x1a] sm:$0xff]  ;;  %2428 = vst [vmem:[#allocation5_spill] sm:$0xff] %v1840_v18  ;;  %v1323_v19 = vld [vmem:[%s1759_s6 + $0x22] sm:$0xff] }
  0x2a   : > { %v1365_v28 = vld [vmem:[%s1759_s6 + $0x99] sm:$0xff]  ;;  %v1923_v39 = vld [vmem:[%s1759_s6 + $0xa8] sm:$0xff]  ;;  %v1954_v48 = vld [vmem:[%s1759_s6 + $0x50] sm:$0xff] }
  0x2b   : > { %v1357_v29 = vld [vmem:[%s1759_s6 + $0x39] sm:$0xff]  ;;  %2429 = vst [vmem:[#allocation6_spill] sm:$0xff] %v1923_v39  ;;  %v1926_v40 = vld [vmem:[%s1759_s6 + $0x48] sm:$0xff]  ;;  %2432 = vst [vmem:[#allocation9_spill] sm:$0xff] %v1954_v48 }
  0x2c   : > { %v1380_v33 = vld [vmem:[%s1759_s6 + $0x92] sm:$0xff]  ;;  %v1381_v37 = vld [vmem:[%s1759_s6 + $0x9a] sm:$0xff]  ;;  %2430 = vst [vmem:[#allocation7_spill] sm:$0xff] %v1926_v40  ;;  %v1366_v51 = vld [vmem:[%s1759_s6 + $0xa9] sm:$0xff] }
  0x2d   : > { %408 = vrot.lane.b32.xlu1 %v1783_v6, %s1658_s8  ;;  %392 = vrot.lane.b32.xlu0 %v193_v7, %s1658_s8  ;;  %v1372_v34 = vld [vmem:[%s1759_s6 + $0x32] sm:$0xff]  ;;  %v1373_v38 = vld [vmem:[%s1759_s6 + $0x3a] sm:$0xff] }
  0x2e   : > { %v1358_v52 = vld [vmem:[%s1759_s6 + $0x49] sm:$0xff]  ;;  %v1367_v59 = vld [vmem:[%s1759_s6 + $0xb1] sm:$0xff]  ;;  %v1352_v35 = vld [vmem:[%s1759_s6 + $0xc0] sm:$0xff] }
  0x2f   : > { %v1359_v60 = vld [vmem:[%s1759_s6 + $0x51] sm:$0xff] }
  0x30   : > { %v1382_v63 = vld [vmem:[%s1759_s6 + $0xaa] sm:$0xff]  ;;  %v1375_v26 = vld [vmem:[%s1759_s6 + $0x52] sm:$0xff] }
  0x31   : > { %470 = vrot.lane.b32.xlu1 %v1790_v8, %s1659_s17  ;;  %454 = vrot.lane.b32.xlu0 %v1793_v9, %s1659_s17  ;;  %v1374_v0 = vld [vmem:[%s1759_s6 + $0x4a] sm:$0xff] }
  0x35   : > { %472 = vrot.lane.b32.xlu1 %v1800_v10, %s1659_s17  ;;  %456 = vrot.lane.b32.xlu0 %v1803_v11, %s1659_s17 }
  0x39   : > { %534 = vrot.lane.b32.xlu1 %v1810_v12, %s1660_s18  ;;  %518 = vrot.lane.b32.xlu0 %v1306_v13, %s1660_s18 }
  0x3d   : > { %346 = vrot.lane.b32.xlu1 %v1810_v12, %s1657_s7  ;;  %330 = vrot.lane.b32.xlu0 %v1306_v13, %s1657_s7 }
  0x41   : > { %536 = vrot.lane.b32.xlu1 %v1820_v14, %s1660_s18  ;;  %520 = vrot.lane.b32.xlu0 %v1307_v15, %s1660_s18 }
  0x45   : > { %598 = vrot.lane.b32.xlu1 %v1827_v16, %s1661_s21  ;;  %582 = vrot.lane.b32.xlu0 %v1322_v17, %s1661_s21 }
  0x49   : > { %348 = vrot.lane.b32.xlu1 %v1820_v14, %s1657_s7  ;;  %332 = vrot.lane.b32.xlu0 %v1307_v15, %s1657_s7 }
  0x4d   : > { %410 = vrot.lane.b32.xlu1 %v1827_v16, %s1658_s8  ;;  %394 = vrot.lane.b32.xlu0 %v1322_v17, %s1658_s8 }
  0x51   : > { %600 = vrot.lane.b32.xlu1 %v1840_v18, %s1661_s21  ;;  %584 = vrot.lane.b32.xlu0 %v1323_v19, %s1661_s21 }
  0x55   : > { %662 = vrot.lane.b32.xlu1 %v1847_v20, %s1662_s24  ;;  %646 = vrot.lane.b32.xlu0 %v1850_v21, %s1662_s24 }
  0x59   : > { %412 = vrot.lane.b32.xlu1 %v1840_v18, %s1658_s8  ;;  %396 = vrot.lane.b32.xlu0 %v1323_v19, %s1658_s8 }
  0x5d   : > { %474 = vrot.lane.b32.xlu1 %v1847_v20, %s1659_s17  ;;  %458 = vrot.lane.b32.xlu0 %v1850_v21, %s1659_s17 }
  0x61   : > { %664 = vrot.lane.b32.xlu1 %v1864_v22, %s1662_s24  ;;  %648 = vrot.lane.b32.xlu0 %v1867_v23, %s1662_s24 }
  0x65   : > { %726 = vrot.lane.b32.xlu1 %v1364_v24, %s1663_s25  ;;  %710 = vrot.lane.b32.xlu0 %v1356_v25, %s1663_s25 }
  0x69   : > { %476 = vrot.lane.b32.xlu1 %v1864_v22, %s1659_s17  ;;  %460 = vrot.lane.b32.xlu0 %v1867_v23, %s1659_s17 }
  0x6d   : > { %538 = vrot.lane.b32.xlu1 %v1364_v24, %s1660_s18  ;;  %522 = vrot.lane.b32.xlu0 %v1356_v25, %s1660_s18 }
  0x71   : > { %728 = vrot.lane.b32.xlu1 %v1365_v28, %s1663_s25  ;;  %712 = vrot.lane.b32.xlu0 %v1357_v29, %s1663_s25 }
  0x75   : > { %790 = vrot.lane.b32.xlu1 %v1380_v33, %s1664_s28  ;;  %774 = vrot.lane.b32.xlu0 %v1372_v34, %s1664_s28 }
  0x79   : > { %350 = vrot.lane.b32.xlu1 %v1364_v24, %s1657_s7  ;;  %334 = vrot.lane.b32.xlu0 %v1356_v25, %s1657_s7  ;;  %v1383_v25 = vld [vmem:[%s1759_s6 + $0xb2] sm:$0xff] }
  0x7d   : > { %540 = vrot.lane.b32.xlu1 %v1365_v28, %s1660_s18  ;;  %524 = vrot.lane.b32.xlu0 %v1357_v29, %s1660_s18 }
  0x81   : > { %602 = vrot.lane.b32.xlu1 %v1380_v33, %s1661_s21  ;;  %586 = vrot.lane.b32.xlu0 %v1372_v34, %s1661_s21 }
  0x85   : > { %792 = vrot.lane.b32.xlu1 %v1381_v37, %s1664_s28  ;;  %776 = vrot.lane.b32.xlu0 %v1373_v38, %s1664_s28 }
  0x89   : > { %352 = vrot.lane.b32.xlu1 %v1365_v28, %s1657_s7  ;;  %336 = vrot.lane.b32.xlu0 %v1357_v29, %s1657_s7 }
  0x8d   : > { %414 = vrot.lane.b32.xlu1 %v1380_v33, %s1658_s8  ;;  %398 = vrot.lane.b32.xlu0 %v1372_v34, %s1658_s8 }
  0x91   : > { %604 = vrot.lane.b32.xlu1 %v1381_v37, %s1661_s21  ;;  %588 = vrot.lane.b32.xlu0 %v1373_v38, %s1661_s21 }
  0x93   : > { %v1928_v41 = vpop.permute.xlu1 %328  ;;  %v1930_v42 = vpop.permute.xlu0 %326 }
  0x95   : > { %666 = vrot.lane.b32.xlu1 %v1923_v39, %s1662_s24  ;;  %650 = vrot.lane.b32.xlu0 %v1926_v40, %s1662_s24 }
  0x97   : > { %v1936_v43 = vpop.permute.xlu1 %344  ;;  %v1938_v44 = vpop.permute.xlu0 %342 }
  0x99   : > { %416 = vrot.lane.b32.xlu1 %v1381_v37, %s1658_s8  ;;  %400 = vrot.lane.b32.xlu0 %v1373_v38, %s1658_s8  ;;  %v168_v38 = vld [vmem:[%s1759_s6 + $0x60] sm:$0xff] }
  0x9b   : > { %v1942_v45 = vpop.permute.xlu1 %406  ;;  %v1944_v46 = vpop.permute.xlu0 %390 }
  0x9d   : > { %478 = vrot.lane.b32.xlu1 %v1923_v39, %s1659_s17  ;;  %462 = vrot.lane.b32.xlu0 %v1926_v40, %s1659_s17 }
  0x9f   : > { %v1956_v49 = vpop.permute.xlu1 %408  ;;  %v1958_v50 = vpop.permute.xlu0 %392 }
  0xa1   : > { %668 = vrot.lane.b32.xlu1 %v1951_v47, %s1662_s24  ;;  %652 = vrot.lane.b32.xlu0 %v1954_v48, %s1662_s24 }
  0xa3   : > { %v1966_v53 = vpop.permute.xlu1 %470  ;;  %v1968_v54 = vpop.permute.xlu0 %454 }
  0xa5   : > { %730 = vrot.lane.b32.xlu1 %v1366_v51, %s1663_s25  ;;  %714 = vrot.lane.b32.xlu0 %v1358_v52, %s1663_s25 }
  0xa7   : > { %v1972_v55 = vpop.permute.xlu1 %472  ;;  %v1974_v56 = vpop.permute.xlu0 %456 }
  0xa9   : > { %480 = vrot.lane.b32.xlu1 %v1951_v47, %s1659_s17  ;;  %464 = vrot.lane.b32.xlu0 %v1954_v48, %s1659_s17  ;;  %v1353_v47 = vld [vmem:[%s1759_s6 + $0xc8] sm:$0xff] }
  0xab   : > { %v1980_v57 = vpop.permute.xlu1 %534  ;;  %v1982_v58 = vpop.permute.xlu0 %518 }
  0xad   : > { %542 = vrot.lane.b32.xlu1 %v1366_v51, %s1660_s18  ;;  %526 = vrot.lane.b32.xlu0 %v1358_v52, %s1660_s18 }
  0xaf   : > { %v347_v61 = vpop.permute.xlu1 %346  ;;  %v331_v62 = vpop.permute.xlu0 %330 }
  0xb1   : > { %732 = vrot.lane.b32.xlu1 %v1367_v59, %s1663_s25  ;;  %716 = vrot.lane.b32.xlu0 %v1359_v60, %s1663_s25 }
  0xb3   : > { %v1992_v1 = vpop.permute.xlu1 %536  ;;  %v1994_v5 = vpop.permute.xlu0 %520 }
  0xb5   : > { %794 = vrot.lane.b32.xlu1 %v1382_v63, %s1664_s28  ;;  %778 = vrot.lane.b32.xlu0 %v1374_v0, %s1664_s28 }
  0xb7   : > { %v1998_v7 = vpop.permute.xlu1 %598  ;;  %v2000_v13 = vpop.permute.xlu0 %582 }
  0xb9   : > { %354 = vrot.lane.b32.xlu1 %v1366_v51, %s1657_s7  ;;  %338 = vrot.lane.b32.xlu0 %v1358_v52, %s1657_s7 }
  0xbb   : > { %v2004_v15 = vpop.permute.xlu1 %348  ;;  %v2006_v17 = vpop.permute.xlu0 %332 }
  0xbd   : > { %544 = vrot.lane.b32.xlu1 %v1367_v59, %s1660_s18  ;;  %528 = vrot.lane.b32.xlu0 %v1359_v60, %s1660_s18 }
  0xbf   : > { %v411_v19 = vpop.permute.xlu1 %410  ;;  %v395_v24 = vpop.permute.xlu0 %394 }
  0xc1   : > { %606 = vrot.lane.b32.xlu1 %v1382_v63, %s1661_s21  ;;  %590 = vrot.lane.b32.xlu0 %v1374_v0, %s1661_s21 }
  0xc3   : > { %v2014_v27 = vpop.permute.xlu1 %600  ;;  %v2016_v28 = vpop.permute.xlu0 %584 }
  0xc5   : > { %796 = vrot.lane.b32.xlu1 %v1383_v25, %s1664_s28  ;;  %780 = vrot.lane.b32.xlu0 %v1375_v26, %s1664_s28 }
  0xc7   : > { %v2020_v29 = vpop.permute.xlu1 %662  ;;  %v2022_v30 = vpop.permute.xlu0 %646 }
  0xc9   : > { %356 = vrot.lane.b32.xlu1 %v1367_v59, %s1657_s7  ;;  %340 = vrot.lane.b32.xlu0 %v1359_v60, %s1657_s7 }
  0xcb   : > { %v2026_v31 = vpop.permute.xlu1 %412  ;;  %v2028_v32 = vpop.permute.xlu0 %396 }
  0xcd   : > { %418 = vrot.lane.b32.xlu1 %v1382_v63, %s1658_s8  ;;  %402 = vrot.lane.b32.xlu0 %v1374_v0, %s1658_s8  ;;  %v833_v63 = vsel %vm822_vm1, %v1790_v8, %v347_v61  ;;  %v825_v0 = vsel %vm822_vm1, %v1793_v9, %v331_v62  ;;  %v169_v9 = vld [vmem:[%s1759_s6 + $0x68] sm:$0xff] }
  0xce   : > { %v842_v48 = vsel %vm839_vm2, %v825_v0, %v395_v24  ;;  %v831_v24 = vsel %vm822_vm1, %v168_v38, %v1938_v44 }
  0xcf   : > { %v475_v33 = vpop.permute.xlu1 %474  ;;  %v459_v34 = vpop.permute.xlu0 %458 }
  0xd0   : > { %v859_v61 = vsel %vm856_vm3, %v842_v48, %v459_v34  ;;  %v848_v48 = vsel %vm839_vm2, %v831_v24, %v1942_v45 }
  0xd1   : > { %608 = vrot.lane.b32.xlu1 %v1383_v25, %s1661_s21  ;;  %592 = vrot.lane.b32.xlu0 %v1375_v26, %s1661_s21 }
  0xd3   : > { %v2035_v36 = vpop.permute.xlu1 %664  ;;  %v2037_v37 = vpop.permute.xlu0 %648 }
  0xd5   : > { %670 = vrot.lane.b32.xlu1 %v1352_v35, %s1662_s24  ;;  %654 = vrot.lane.b32.xlu0 %v168_v38, %s1662_s24 }
  0xd7   : > { %v727_v51 = vpop.permute.xlu1 %726  ;;  %v711_v52 = vpop.permute.xlu0 %710 }
  0xd9   : > { %420 = vrot.lane.b32.xlu1 %v1383_v25, %s1658_s8  ;;  %404 = vrot.lane.b32.xlu0 %v1375_v26, %s1658_s8  ;;  %v160_v25 = vld [vmem:[%s1759_s6] sm:$0xff]  ;;  %v850_v26 = vsel %vm839_vm2, %v833_v63, %v411_v19 }
  0xda   : > { %v867_v40 = vsel %vm856_vm3, %v850_v26, %v475_v33  ;;  %v823_v19 = vsel %vm822_vm1, %v160_v25, %v1930_v42 }
  0xdb   : > { %v2044_v59 = vpop.permute.xlu1 %476  ;;  %v2046_v60 = vpop.permute.xlu0 %460 }
  0xdd   : > { %482 = vrot.lane.b32.xlu1 %v1352_v35, %s1659_s17  ;;  %466 = vrot.lane.b32.xlu0 %v168_v38, %s1659_s17 }
  0xdf   : > { %v539_v39 = vpop.permute.xlu1 %538  ;;  %v523_v18 = vpop.permute.xlu0 %522 }
  0xe0   : > { %v2062_v62 = vsel %vm873_vm4, %v867_v40, %v539_v39  ;;  %v2065_v35 = vsel %vm873_vm4, %v859_v61, %v523_v18  ;;  %v840_v39 = vsel %vm839_vm2, %v823_v19, %v1944_v46  ;;  %v1368_v40 = vld [vmem:[%s1759_s6 + $0xc1] sm:$0xff]  ;;  %v865_v18 = vsel %vm856_vm3, %v848_v48, %v1966_v53  ;;  %v1369_v61 = vld [vmem:[%s1759_s6 + $0xc9] sm:$0xff] }
  0xe1   : > { %672 = vrot.lane.b32.xlu1 %v1353_v47, %s1662_s24  ;;  %656 = vrot.lane.b32.xlu0 %v169_v9, %s1662_s24  ;;  %v857_v42 = vsel %vm856_vm3, %v840_v39, %v1968_v54  ;;  %v882_v34 = vsel %vm873_vm4, %v865_v18, %v1980_v57  ;;  %v1384_v48 = vld [vmem:[%s1759_s6 + $0xc2] sm:$0xff] }
  0xe2   : > { %v874_v45 = vsel %vm873_vm4, %v857_v42, %v1982_v58  ;;  %v899_v46 = vsel %vm890_vm5, %v882_v34, %v1998_v7 }
  0xe3   : > { %v729_v44 = vpop.permute.xlu1 %728  ;;  %v713_v33 = vpop.permute.xlu0 %712  ;;  %v891_v38 = vsel %vm890_vm5, %v874_v45, %v2000_v13  ;;  %v916_v53 = vsel %vm907_vm6, %v899_v46, %v2020_v29 }
  0xe4   : > { %v908_v54 = vsel %vm907_vm6, %v891_v38, %v2022_v30  ;;  %v933_v57 = vsel %vm924_vm7, %v916_v53, %v727_v51  ;;  %v834_v51 = vsel %vm822_vm1, %v1800_v10, %v2004_v15 }
  0xe5   : > { %734 = vrot.lane.b32.xlu1 %v1368_v40, %s1663_s25  ;;  %718 = vrot.lane.b32.xlu0 %v1769_v3, %s1663_s25  ;;  %v925_v58 = vsel %vm924_vm7, %v908_v54, %v711_v52  ;;  %v826_v52 = vsel %vm822_vm1, %v1803_v11, %v2006_v17  ;;  %v851_v25 = vsel %vm839_vm2, %v834_v51, %v2026_v31 }
  0xe6   : > { %v843_v26 = vsel %vm839_vm2, %v826_v52, %v2028_v32  ;;  %v868_v15 = vsel %vm856_vm3, %v851_v25, %v2044_v59  ;;  %v832_v32 = vsel %vm822_vm1, %v169_v9, %v1936_v43  ;;  %v1371_v52 = vld [vmem:[%s1759_s6 + $0xe1] sm:$0xff] }
  0xe7   : > { %v791_v7 = vpop.permute.xlu1 %790  ;;  %v775_v63 = vpop.permute.xlu0 %774  ;;  %v860_v11 = vsel %vm856_vm3, %v843_v26, %v2046_v60  ;;  %v849_v59 = vsel %vm839_vm2, %v832_v32, %v1956_v49 }
  0xe8   : > { %v942_v13 = vsel %vm941_vm8, %v925_v58, %v775_v63  ;;  %v950_v0 = vsel %vm941_vm8, %v933_v57, %v791_v7  ;;  %v866_v39 = vsel %vm856_vm3, %v849_v59, %v1972_v55  ;;  %v1355_v58 = vld [vmem:[%s1759_s6 + $0xe0] sm:$0xff] }
  0xe9   : > { %484 = vrot.lane.b32.xlu1 %v1353_v47, %s1659_s17  ;;  %468 = vrot.lane.b32.xlu0 %v169_v9, %s1659_s17  ;;  %v161_v47 = vld [vmem:[%s1759_s6 + $0x8] sm:$0xff]  ;;  %v883_v9 = vsel %vm873_vm4, %v866_v39, %v1992_v1 }
  0xea   : > { %1442 = vmatprep.mubr.msk.f32.mxu0 %vm963_vm9, %v942_v13  ;;  %1454 = vmatprep.mubr.msk.f32.mxu1 %vm963_vm9, %v950_v0  ;;  %v824_v31 = vsel %vm822_vm1, %v161_v47, %v1928_v41 }
  0xeb   : > { %v351_v29 = vpop.permute.xlu1 %350  ;;  %v335_v30 = vpop.permute.xlu0 %334  ;;  %v841_v60 = vsel %vm839_vm2, %v824_v31, %v1958_v50  ;;  %v900_v50 = vsel %vm890_vm5, %v883_v9, %v2014_v27  ;;  %v2433_v31 = vld [vmem:[#allocation5_spill] sm:$0xff] }
  0xec   : > { %v858_v41 = vsel %vm856_vm3, %v841_v60, %v1974_v56  ;;  %v917_v55 = vsel %vm907_vm6, %v900_v50, %v2035_v36  ;;  %v827_v45 = vsel %vm822_vm1, %v1850_v21, %v335_v30 }
  0xed   : > { %546 = vrot.lane.b32.xlu1 %v1368_v40, %s1660_s18  ;;  %530 = vrot.lane.b32.xlu0 %v1769_v3, %s1660_s18  ;;  %v875_v49 = vsel %vm873_vm4, %v858_v41, %v1994_v5  ;;  %v934_v1 = vsel %vm924_vm7, %v917_v55, %v729_v44  ;;  %v1385_v44 = vld [vmem:[%s1759_s6 + $0xca] sm:$0xff] }
  0xee   : > { %v892_v18 = vsel %vm890_vm5, %v875_v49, %v2016_v28 }
  0xef   : > { %v541_v17 = vpop.permute.xlu1 %540  ;;  %v525_v19 = vpop.permute.xlu0 %524  ;;  %v909_v56 = vsel %vm907_vm6, %v892_v18, %v2037_v37 }
  0xf0   : > { %v2125_v24 = vsel %vm873_vm4, %v868_v15, %v541_v17  ;;  %v2128_v3 = vsel %vm873_vm4, %v860_v11, %v525_v19  ;;  %v926_v5 = vsel %vm924_vm7, %v909_v56, %v713_v33  ;;  %v835_v33 = vsel %vm822_vm1, %v1847_v20, %v351_v29  ;;  %v1354_v20 = vld [vmem:[%s1759_s6 + $0xd8] sm:$0xff]  ;;  %v1387_v15 = vld [vmem:[%s1759_s6 + $0xe2] sm:$0xff] }
  0xf1   : > { %736 = vrot.lane.b32.xlu1 %v1369_v61, %s1663_s25  ;;  %720 = vrot.lane.b32.xlu0 %v1766_v2, %s1663_s25 }
  0xf3   : > { %v2146_v40 = vpop.permute.xlu1 %602  ;;  %v2148_v43 = vpop.permute.xlu0 %586 }
  0xf4   : > { %v901_v39 = vsel %vm890_vm5, %v2062_v62, %v2146_v40  ;;  %v893_v41 = vsel %vm890_vm5, %v2065_v35, %v2148_v43 }
  0xf5   : > { %798 = vrot.lane.b32.xlu1 %v1384_v48, %s1664_s28  ;;  %782 = vrot.lane.b32.xlu0 %v1776_v4, %s1664_s28 }
  0xf7   : > { %v793_v27 = vpop.permute.xlu1 %792  ;;  %v777_v42 = vpop.permute.xlu0 %776 }
  0xf8   : > { %v951_v28 = vsel %vm941_vm8, %v934_v1, %v793_v27  ;;  %v943_v34 = vsel %vm941_vm8, %v926_v5, %v777_v42 }
  0xf9   : > { %548 = vrot.lane.b32.xlu1 %v1369_v61, %s1660_s18  ;;  %532 = vrot.lane.b32.xlu0 %v1766_v2, %s1660_s18  ;;  %s1406_s18 = sshll.u32 %s1639_s12, 4 }
  0xfa   : > { %1443 = vmatmul.mubr.msk.f32.vlgmr.msra.gmra.mrb[0].mxu0 %vm963_vm9, %v943_v34  ;;  %1455 = vmatmul.mubr.msk.f32.vlgmr.msra.gmra.mrb[0].mxu1 %vm963_vm9, %v951_v28 }
  0xfb   : > { %v353_v36 = vpop.permute.xlu1 %352  ;;  %v337_v37 = vpop.permute.xlu0 %336 }
  0xfc   : > { %v836_v7 = vsel %vm822_vm1, %v1864_v22, %v353_v36  ;;  %v828_v63 = vsel %vm822_vm1, %v1867_v23, %v337_v37 }
  0xfd   : > { %610 = vrot.lane.b32.xlu1 %v1384_v48, %s1661_s21  ;;  %594 = vrot.lane.b32.xlu0 %v1776_v4, %s1661_s21 }
  0xff   : > { %v415_v2 = vpop.permute.xlu1 %414  ;;  %v399_v46 = vpop.permute.xlu0 %398 }
 0x100   : > { %v852_v38 = vsel %vm839_vm2, %v835_v33, %v415_v2  ;;  %v844_v53 = vsel %vm839_vm2, %v827_v45, %v399_v46 }
 0x101   : > { %800 = vrot.lane.b32.xlu1 %v1385_v44, %s1664_s28  ;;  %784 = vrot.lane.b32.xlu0 %v1783_v6, %s1664_s28 }
 0x103   : > { %v2187_v4 = vpop.permute.xlu1 %604  ;;  %v2189_v54 = vpop.permute.xlu0 %588 }
 0x104   : > { %v902_v36 = vsel %vm890_vm5, %v2125_v24, %v2187_v4  ;;  %v894_v37 = vsel %vm890_vm5, %v2128_v3, %v2189_v54  ;;  %v2434_v4 = vld [vmem:[#allocation6_spill] sm:$0xff] }
 0x105   : > { %612 = vrot.lane.b32.xlu1 %v1385_v44, %s1661_s21  ;;  %596 = vrot.lane.b32.xlu0 %v1783_v6, %s1661_s21  ;;  %s1407_s21 = sshll.u32 %s1643_s13, 5 }
 0x107   : > { %v667_v21 = vpop.permute.xlu1 %666  ;;  %v651_v57 = vpop.permute.xlu0 %650 }
 0x108   : > { %v918_v9 = vsel %vm907_vm6, %v901_v39, %v667_v21  ;;  %v910_v49 = vsel %vm907_vm6, %v893_v41, %v651_v57  ;;  %v2435_v21 = vld [vmem:[#allocation7_spill] sm:$0xff] }
 0x109   : > { %674 = vrot.lane.b32.xlu1 %v1354_v20, %s1662_s24  ;;  %658 = vrot.lane.b32.xlu0 %v1790_v8, %s1662_s24  ;;  %v1370_v8 = vld [vmem:[%s1759_s6 + $0xd9] sm:$0xff] }
 0x10b   : > { %v417_v13 = vpop.permute.xlu1 %416  ;;  %v401_v0 = vpop.permute.xlu0 %400 }
 0x10c   : > { %v853_v6 = vsel %vm839_vm2, %v836_v7, %v417_v13  ;;  %v845_v29 = vsel %vm839_vm2, %v828_v63, %v401_v0 }
 0x10d   : > { %676 = vrot.lane.b32.xlu1 %v1355_v58, %s1662_s24  ;;  %660 = vrot.lane.b32.xlu0 %v1800_v10, %s1662_s24  ;;  %v1386_v10 = vld [vmem:[%s1759_s6 + $0xda] sm:$0xff]  ;;  %s148_s6 = sand.u32 1, %s1631_s10   ;;  %s1190_s24 = sadd.s32 %s1407_s21, %s1406_s18 }
 0x10e   : > { %s1284_s7 = sshll.u32 %s148_s6, 7  ;;  %s2365_s12 = scalar_lea.sflag [#allocation3], %s148_s6 }
 0x10f   : > { %v479_v30 = vpop.permute.xlu1 %478  ;;  %v463_v51 = vpop.permute.xlu0 %462  ;;  %s2335_s17 = scalar_lea.vmem [#allocation2], %s1284_s7 }
 0x110   : > { %v869_v22 = vsel %vm856_vm3, %v852_v38, %v479_v30  ;;  %v861_v23 = vsel %vm856_vm3, %v844_v53, %v463_v51  ;;  %s1193_s3 = sshll.u32 %s2335_s17, 4  ;;  %s2357_s3 = int_to_ptr.vmem [resolvable:$true] %s1193_s3 }
 0x111   : > { %738 = vrot.lane.b32.xlu1 %v1370_v8, %s1663_s25  ;;  %722 = vrot.lane.b32.xlu0 %v1810_v12, %s1663_s25  ;;  %s1561_s13 = scalar_lea.vmem %s2357_s3, 2048 }
 0x112   : > { %p1562_p13 = scmp.ne.s32.totalorder %s2357_s3, %s1561_s13 }
 0x113   : > { %v669_v47 = vpop.permute.xlu1 %668  ;;  %v653_v25 = vpop.permute.xlu0 %652 }
 0x114   : > { %v919_v44 = vsel %vm907_vm6, %v902_v36, %v669_v47  ;;  %v911_v33 = vsel %vm907_vm6, %v894_v37, %v653_v25  ;;  %p1563_p0 = pnand %p1562_p13, %p1733_p3 }
 0x115   : > { %740 = vrot.lane.b32.xlu1 %v1371_v52, %s1663_s25  ;;  %724 = vrot.lane.b32.xlu0 %v1820_v14, %s1663_s25  ;;  %s1408_s25 = sshll.u32 %s1190_s24, 7 }
 0x116   : > { %s2355_s26 = scalar_lea.hbm %s2420_s2, %s1408_s25  ;;  %p1564_p1 = pneg %p1563_p0 }
 0x117   : > { %v731_v26 = vpop.permute.xlu1 %730  ;;  %v715_v61 = vpop.permute.xlu0 %714 }
 0x118   : > { %v935_v50 = vsel %vm924_vm7, %v918_v9, %v731_v26  ;;  %v927_v18 = vsel %vm924_vm7, %v910_v49, %v715_v61 }
 0x119   : > { %802 = vrot.lane.b32.xlu1 %v1386_v10, %s1664_s28  ;;  %786 = vrot.lane.b32.xlu0 %v1827_v16, %s1664_s28 }
 0x11b   : > { %v481_v11 = vpop.permute.xlu1 %480  ;;  %v465_v17 = vpop.permute.xlu0 %464 }
 0x11c   : > { %v870_v12 = vsel %vm856_vm3, %v853_v6, %v481_v11  ;;  %v862_v19 = vsel %vm856_vm3, %v845_v29, %v465_v17 }
 0x11d   : > { %804 = vrot.lane.b32.xlu1 %v1387_v15, %s1664_s28  ;;  %788 = vrot.lane.b32.xlu0 %v2433_v31, %s1664_s28  ;;  %s1665_s28 = smov [#allocation2]  }
 0x11e   : > { %s1565_s29 = sshll.u32 %s1665_s28, 4  ;;  %s1566_s29 = int_to_ptr.vmem [resolvable:$false] %s1565_s29 }
 0x11f   : > { %v543_v14 = vpop.permute.xlu1 %542  ;;  %v527_v32 = vpop.permute.xlu0 %526  ;;  %s1567_s30 = scalar_lea.vmem %s1566_s29, 4096  ;;  %p1568_p2 = scmp.lt.s32.totalorder %s2357_s3, %s1566_s29 }
 0x120   : > { %v2229_v59 = vsel %vm873_vm4, %v869_v22, %v543_v14  ;;  %v2232_v60 = vsel %vm873_vm4, %v861_v23, %v527_v32  ;;  %p1569_p4 = scmp.lt.s32.totalorder %s1567_s30, %s1561_s13 }
 0x122   : > { %p1570_p5 = por %p1569_p4, %p1568_p2 }
 0x123   : > { %v733_v16 = vpop.permute.xlu1 %732  ;;  %v717_v48 = vpop.permute.xlu0 %716 }
 0x124   : > { %v936_v45 = vsel %vm924_vm7, %v919_v44, %v733_v16  ;;  %v928_v2 = vsel %vm924_vm7, %v911_v33, %v717_v48  ;;  %p1571_p6 = pnand %p1570_p5, %p1564_p1 }
 0x127   : > { %v795_v55 = vpop.permute.xlu1 %794  ;;  %v779_v56 = vpop.permute.xlu0 %778 }
 0x128   : > { %v952_v1 = vsel %vm941_vm8, %v935_v50, %v795_v55  ;;  %v944_v5 = vsel %vm941_vm8, %v927_v18, %v779_v56 }
 0x129   : > { %1445 = vmatprep.mubr.msk.f32.mxu0 %vm963_vm9, %v944_v5  ;;  %1457 = vmatprep.mubr.msk.f32.mxu1 %vm963_vm9, %v952_v1 }
 0x12b   : > { %v355_v62 = vpop.permute.xlu1 %354  ;;  %v339_v35 = vpop.permute.xlu0 %338 }
 0x12c   : > { %v837_v54 = vsel %vm822_vm1, %v2434_v4, %v355_v62  ;;  %v829_v57 = vsel %vm822_vm1, %v2435_v21, %v339_v35  ;;  %v2436_v21 = vld [vmem:[#allocation8_spill] sm:$0xff] }
 0x12f   : > { %v545_v40 = vpop.permute.xlu1 %544  ;;  %v529_v43 = vpop.permute.xlu0 %528 }
 0x130   : > { %v887_v27 = vsel %vm873_vm4, %v870_v12, %v545_v40  ;;  %v879_v42 = vsel %vm873_vm4, %v862_v19, %v529_v43 }
 0x133   : > { %v607_v28 = vpop.permute.xlu1 %606  ;;  %v591_v34 = vpop.permute.xlu0 %590 }
 0x134   : > { %v903_v19 = vsel %vm890_vm5, %v2229_v59, %v607_v28  ;;  %v895_v31 = vsel %vm890_vm5, %v2232_v60, %v591_v34 }
 0x137   : > { %v797_v46 = vpop.permute.xlu1 %796  ;;  %v781_v38 = vpop.permute.xlu0 %780 }
 0x138   : > { %v953_v53 = vsel %vm941_vm8, %v936_v45, %v797_v46  ;;  %v945_v20 = vsel %vm941_vm8, %v928_v2, %v781_v38 }
 0x139   : > { %1446 = vmatmul.mubr.msk.f32.gmra.mrb[2].mxu0 %vm963_vm9, %v945_v20  ;;  %1458 = vmatmul.mubr.msk.f32.gmra.mrb[2].mxu1 %vm963_vm9, %v953_v53 }
 0x13b   : > { %v2264_v24 = vpop.permute.xlu1 %356  ;;  %v2266_v3 = vpop.permute.xlu0 %340 }
 0x13f   : > { %v419_v58 = vpop.permute.xlu1 %418  ;;  %v403_v7 = vpop.permute.xlu0 %402 }
 0x140   : > { %v854_v63 = vsel %vm839_vm2, %v837_v54, %v419_v58  ;;  %v846_v13 = vsel %vm839_vm2, %v829_v57, %v403_v7  ;;  %v838_v57 = vsel %vm822_vm1, %v2436_v21, %v2264_v24  ;;  %v2437_v58 = vld [vmem:[#allocation9_spill] sm:$0xff] }
 0x141   : > { %v830_v7 = vsel %vm822_vm1, %v2437_v58, %v2266_v3 }
 0x143   : > { %v609_v0 = vpop.permute.xlu1 %608  ;;  %v593_v6 = vpop.permute.xlu0 %592 }
 0x144   : > { %v904_v55 = vsel %vm890_vm5, %v887_v27, %v609_v0  ;;  %v896_v56 = vsel %vm890_vm5, %v879_v42, %v593_v6 }
 0x147   : > { %v671_v29 = vpop.permute.xlu1 %670  ;;  %v655_v8 = vpop.permute.xlu0 %654 }
 0x148   : > { %v920_v14 = vsel %vm907_vm6, %v903_v19, %v671_v29  ;;  %v912_v32 = vsel %vm907_vm6, %v895_v31, %v655_v8 }
 0x14b   : > { %v421_v30 = vpop.permute.xlu1 %420  ;;  %v405_v51 = vpop.permute.xlu0 %404 }
 0x14c   : > { %v847_v6 = vsel %vm839_vm2, %v830_v7, %v405_v51 }
 0x14f   : > { %v483_v22 = vpop.permute.xlu1 %482  ;;  %v467_v23 = vpop.permute.xlu0 %466 }
 0x150   : > { %v871_v46 = vsel %vm856_vm3, %v854_v63, %v483_v22  ;;  %v863_v38 = vsel %vm856_vm3, %v846_v13, %v467_v23  ;;  %v855_v13 = vsel %vm839_vm2, %v838_v57, %v421_v30 }
 0x153   : > { %v673_v52 = vpop.permute.xlu1 %672  ;;  %v657_v47 = vpop.permute.xlu0 %656 }
 0x154   : > { %v921_v1 = vsel %vm907_vm6, %v904_v55, %v673_v52  ;;  %v913_v5 = vsel %vm907_vm6, %v896_v56, %v657_v47 }
 0x157   : > { %v735_v25 = vpop.permute.xlu1 %734  ;;  %v719_v10 = vpop.permute.xlu0 %718 }
 0x158   : > { %v937_v16 = vsel %vm924_vm7, %v920_v14, %v735_v25  ;;  %v929_v48 = vsel %vm924_vm7, %v912_v32, %v719_v10 }
 0x15b   : > { %v485_v26 = vpop.permute.xlu1 %484  ;;  %v469_v61 = vpop.permute.xlu0 %468 }
 0x15c   : > { %v872_v22 = vsel %vm856_vm3, %v855_v13, %v485_v26  ;;  %v864_v24 = vsel %vm856_vm3, %v847_v6, %v469_v61 }
 0x15f   : > { %v547_v15 = vpop.permute.xlu1 %546  ;;  %v531_v11 = vpop.permute.xlu0 %530 }
 0x160   : > { %v888_v4 = vsel %vm873_vm4, %v871_v46, %v547_v15  ;;  %v880_v54 = vsel %vm873_vm4, %v863_v38, %v531_v11 }
 0x163   : > { %v737_v17 = vpop.permute.xlu1 %736  ;;  %v721_v12 = vpop.permute.xlu0 %720 }
 0x164   : > { %v938_v62 = vsel %vm924_vm7, %v921_v1, %v737_v17  ;;  %v930_v35 = vsel %vm924_vm7, %v913_v5, %v721_v12 }
 0x167   : > { %v799_v39 = vpop.permute.xlu1 %798  ;;  %v783_v41 = vpop.permute.xlu0 %782 }
 0x168   : > { %v954_v9 = vsel %vm941_vm8, %v937_v16, %v799_v39  ;;  %v946_v49 = vsel %vm941_vm8, %v929_v48, %v783_v41 }
 0x169   : > { %1448 = vmatprep.mubr.msk.f32.mxu0 %vm963_vm9, %v946_v49  ;;  %1460 = vmatprep.mubr.msk.f32.mxu1 %vm963_vm9, %v954_v9 }
 0x16b   : > { %v549_v59 = vpop.permute.xlu1 %548  ;;  %v533_v60 = vpop.permute.xlu0 %532 }
 0x16c   : > { %v889_v25 = vsel %vm873_vm4, %v872_v22, %v549_v59  ;;  %v881_v30 = vsel %vm873_vm4, %v864_v24, %v533_v60 }
 0x16f   : > { %v611_v50 = vpop.permute.xlu1 %610  ;;  %v595_v18 = vpop.permute.xlu0 %594 }
 0x170   : > { %v905_v0 = vsel %vm890_vm5, %v888_v4, %v611_v50  ;;  %v897_v63 = vsel %vm890_vm5, %v880_v54, %v595_v18 }
 0x173   : > { %v801_v40 = vpop.permute.xlu1 %800  ;;  %v785_v43 = vpop.permute.xlu0 %784 }
 0x174   : > { %v955_v28 = vsel %vm941_vm8, %v938_v62, %v801_v40  ;;  %v947_v34 = vsel %vm941_vm8, %v930_v35, %v785_v43 }
 0x175   : > { %1449 = vmatmul.mubr.msk.f32.gmra.mrb[4].mxu0 %vm963_vm9, %v947_v34  ;;  %1461 = vmatmul.mubr.msk.f32.gmra.mrb[4].mxu1 %vm963_vm9, %v955_v28 }
 0x177   : > { %v613_v27 = vpop.permute.xlu1 %612  ;;  %v597_v42 = vpop.permute.xlu0 %596 }
 0x178   : > { %v906_v26 = vsel %vm890_vm5, %v889_v25, %v613_v27  ;;  %v898_v61 = vsel %vm890_vm5, %v881_v30, %v597_v42 }
 0x17b   : > { %v675_v36 = vpop.permute.xlu1 %674  ;;  %v659_v37 = vpop.permute.xlu0 %658 }
 0x17c   : > { %v922_v29 = vsel %vm907_vm6, %v905_v0, %v675_v36  ;;  %v914_v8 = vsel %vm907_vm6, %v897_v63, %v659_v37 }
 0x17f   : > { %v677_v44 = vpop.permute.xlu1 %676  ;;  %v661_v33 = vpop.permute.xlu0 %660 }
 0x180   : > { %v923_v15 = vsel %vm907_vm6, %v906_v26, %v677_v44  ;;  %v915_v11 = vsel %vm907_vm6, %v898_v61, %v661_v33 }
 0x183   : > { %v739_v45 = vpop.permute.xlu1 %738  ;;  %v723_v2 = vpop.permute.xlu0 %722 }
 0x184   : > { %v939_v23 = vsel %vm924_vm7, %v922_v29, %v739_v45  ;;  %v931_v3 = vsel %vm924_vm7, %v914_v8, %v723_v2 }
 0x187   : > { %v741_v53 = vpop.permute.xlu1 %740  ;;  %v725_v20 = vpop.permute.xlu0 %724 }
 0x188   : > { %v940_v17 = vsel %vm924_vm7, %v923_v15, %v741_v53  ;;  %v932_v12 = vsel %vm924_vm7, %v915_v11, %v725_v20 }
 0x18b   : > { %v803_v52 = vpop.permute.xlu1 %802  ;;  %v787_v47 = vpop.permute.xlu0 %786 }
 0x18c   : > { %v956_v51 = vsel %vm941_vm8, %v939_v23, %v803_v52  ;;  %v948_v10 = vsel %vm941_vm8, %v931_v3, %v787_v47 }
 0x18d   : > { %1451 = vmatprep.mubr.msk.f32.mxu0 %vm963_vm9, %v948_v10  ;;  %1463 = vmatprep.mubr.msk.f32.mxu1 %vm963_vm9, %v956_v51 }
 0x18f   : > { %v805_v19 = vpop.permute.xlu1 %804  ;;  %v789_v31 = vpop.permute.xlu0 %788 }
 0x190   : > { %v957_v14 = vsel %vm941_vm8, %v940_v17, %v805_v19  ;;  %v949_v32 = vsel %vm941_vm8, %v932_v12, %v789_v31 }
 0x191   : > { %1452 = vmatmul.mubr.msk.f32.gmra.mrb[6].mxu0 %vm963_vm9, %v949_v32  ;;  %1464 = vmatmul.mubr.msk.f32.gmra.mrb[6].mxu1 %vm963_vm9, %v957_v14 }
 0x1cd   : > { %v1444_v16 = vpop.f32.mrb[0].mxu0  ;;  %v1456_v48 = vpop.f32.mrb[0].mxu1 }
 0x1ce   : > { %1162 = vst [vmem:[%s2335_s17 + $0x8] sm:$0xff] %v1444_v16  ;;  %1170 = vst [vmem:[%s2335_s17 + $0x48] sm:$0xff] %v1456_v48  ;;  %v1082_v39 = vpop.f32.mrb[1].mxu0  ;;  %v1122_v41 = vpop.f32.mrb[1].mxu1 }
 0x1cf   : > { %1161 = vst [vmem:[%s2335_s17] sm:$0xff] %v1082_v39  ;;  %1169 = vst [vmem:[%s2335_s17 + $0x40] sm:$0xff] %v1122_v41 }
 0x20c   : > { %v1447_v9 = vpop.f32.mrb[2].mxu0  ;;  %v1459_v49 = vpop.f32.mrb[2].mxu1 }
 0x20d   : > { %1164 = vst [vmem:[%s2335_s17 + $0x18] sm:$0xff] %v1447_v9  ;;  %1172 = vst [vmem:[%s2335_s17 + $0x58] sm:$0xff] %v1459_v49  ;;  %v1092_v59 = vpop.f32.mrb[3].mxu0  ;;  %v1132_v60 = vpop.f32.mrb[3].mxu1 }
 0x20e   : > { %1163 = vst [vmem:[%s2335_s17 + $0x10] sm:$0xff] %v1092_v59  ;;  %1171 = vst [vmem:[%s2335_s17 + $0x50] sm:$0xff] %v1132_v60 }
 0x248   : > { %v1450_v50 = vpop.f32.mrb[4].mxu0  ;;  %v1462_v18 = vpop.f32.mrb[4].mxu1 }
 0x249   : > { %1166 = vst [vmem:[%s2335_s17 + $0x28] sm:$0xff] %v1450_v50  ;;  %1174 = vst [vmem:[%s2335_s17 + $0x68] sm:$0xff] %v1462_v18  ;;  %v1102_v55 = vpop.f32.mrb[5].mxu0  ;;  %v1142_v56 = vpop.f32.mrb[5].mxu1 }
 0x24a   : > { %1165 = vst [vmem:[%s2335_s17 + $0x20] sm:$0xff] %v1102_v55  ;;  %1173 = vst [vmem:[%s2335_s17 + $0x60] sm:$0xff] %v1142_v56 }
 0x264   : > { %v1453_v1 = vpop.f32.mrb[6].mxu0  ;;  %v1465_v5 = vpop.f32.mrb[6].mxu1 }
 0x265   : > { %1168 = vst [vmem:[%s2335_s17 + $0x38] sm:$0xff] %v1453_v1  ;;  %1176 = vst [vmem:[%s2335_s17 + $0x78] sm:$0xff] %v1465_v5  ;;  %v1112_v62 = vpop.f32.mrb[7].mxu0  ;;  %v1152_v35 = vpop.f32.mrb[7].mxu1 }
 0x266   : > { %1167 = vst [vmem:[%s2335_s17 + $0x30] sm:$0xff] %v1112_v62  ;;  %1175 = vst [vmem:[%s2335_s17 + $0x70] sm:$0xff] %v1152_v35 }
 0x267   : > { %1574 = shalt.err (!%p1571_p6)
}
 0x268   : > { %s1575_s6 = scalar_lea.hbm %s2355_s26, 2048  ;;  %s1579_s18 = scalar_lea.hbm %s2420_s2, 8192 }
 0x269   : > { %p1576_p7 = scmp.ne.s32.totalorder %s2355_s26, %s1575_s6  ;;  %p1580_p11 = scmp.lt.u32.totalorder %s2355_s26, %s2420_s2 }
 0x26a   : > { %p1581_p12 = scmp.lt.u32.totalorder %s1579_s18, %s1575_s6  ;;  %p1583_p0 = scmp.lt.u32.totalorder %s1575_s6, %s2355_s26 }
 0x26b   : > { %p1577_p9 = pnand %p1576_p7, %p1733_p3 }
 0x26c   : > { %p1582_p13 = por %p1581_p12, %p1580_p11 }
 0x26d   : > { %p1578_p10 = pneg %p1577_p9 }
 0x26e   : > { %p1584_p1 = por %p1583_p0, %p1582_p13 }
 0x270   : > { %p1585_p2 = pnand %p1584_p1, %p1578_p10 }
 0x272   : > { %1588 = shalt.err (!%p1585_p2)
}
 0x273   : > { %s1666_s25 = smov 128  }
 0x274   : > { %1481 = dma.vmem_to_hbm [thread:$0]  (%p1733_p3), %s2357_s3, 2048, %s2355_s26, %s2365_s12, %s1666_s25, %s1666_s25, %s1658_s8  }
 0x275 PF: > { %p1487_p4 = scmp.ge.s32.totalorder %s1655_s16, 2  ;;  %s1208_s4 = sand.u32 1, %s1627_s9  }
 0x276   : > { %s1209_s5 = scalar_lea.sflag [#allocation3], %s1208_s4 }
 0x277   : > { %p1484_p5 = pnand %p1487_p4, %p1742_p8 }
 0x279   : > { %1622 = dma.done.wait (!%p1484_p5), %s1209_s5, 2048  }
 0x27a   : > { %1624 = vsyncadd (!%p1484_p5), %s1209_s5, 4294965248  ;;  %s15_s16 = sadd.s32 1, %s1655_s16   ;;  %s2438_s9 = smov %s1631_s10 }
 0x27b   : > { %p12_p6 = scmp.ge.s32.totalorder %s15_s16, 6   ;;  %s2439_s10 = smov %s1635_s11 }
 0x27c   : > { %s2440_s11 = smov %s1751_s27  ;;  %s2441_s12 = smov %s1647_s14 }
 0x27d   : > { %s2442_s13 = smov %s1651_s15  ;;  %s2443_s14 = smov %s2446_s19 }
 0x27e   : > { %s2444_s15 = smov %s2450_s20  ;;  %14 = sbr.rel (!%p12_p6) target bundleno = 5 (0x5), region = 66 }
 0x285   :  { %1214 = vsyncpa [#allocation3], 1 }
 0x286   :  { %1216 = vsyncpa [#allocation3 + $0x1], 1 }

</bundles_post_ra>
